<compile_context>
chip_gen: v7x
topology: tpu7x:2x2x1
jax: 0.10.0
libtpu: 0.0.40
codegen_flags: <defaults>
</compile_context>

<pallas_src>
import jax
import jax.numpy as jnp
from jax.experimental import pallas as pl
from jax.experimental.pallas import tpu as pltpu


def _center_loss_kernel(x_ref, y_ref, o_ref):
    # x_ref / y_ref: (TILE_ROWS, LANES) tiles of the flattened inputs.
    # o_ref: (1, LANES) lane-dense partial sums, resident across the inner
    #        (reduction) grid axis for the current chunk.
    @pl.when(pl.program_id(1) == 0)
    def _():
        o_ref[...] = jnp.zeros_like(o_ref)

    d = x_ref[...].astype(jnp.float32) - y_ref[...].astype(jnp.float32)
    # Sublane (XLU) reduce only; keep the 512-lane axis dense.
    o_ref[...] += jnp.sum(d * d, axis=0, keepdims=True)


def center_loss(outputs, targets, *, lanes=512, max_tile_rows=1024,
                num_chunks=2):
    """Returns sum((outputs - targets)**2) / outputs.shape[0] (CenterLoss)."""
    assert outputs.shape == targets.shape, "outputs/targets must match"
    batch = outputs.shape[0]

    x = outputs.reshape(-1)
    y = targets.reshape(-1)
    total = x.shape[0]

    # View the flattened data as (rows, lanes); lanes (=512) is lane-dense.
    rows = pl.cdiv(total, lanes)
    # Row tile: multiple of 32 (covers f32/bf16/int8 sublane packing), capped
    # so 2 inputs x 2 pipeline buffers x tile ~ 8 MiB of VMEM.
    tile_rows = min(max_tile_rows, ((rows + 31) // 32) * 32)

    # Outer parallel chunk axis (v7x megacore); collapse when input is tiny.
    chunks = num_chunks if pl.cdiv(rows, tile_rows) >= num_chunks else 1
    tiles_per_chunk = pl.cdiv(rows, chunks * tile_rows)
    rows_padded = chunks * tiles_per_chunk * tile_rows

    pad = rows_padded * lanes - total
    if pad:
        # Zero padding on both inputs -> zero contribution to the sum.
        x = jnp.pad(x, (0, pad))
        y = jnp.pad(y, (0, pad))
    x2 = x.reshape(rows_padded, lanes)
    y2 = y.reshape(rows_padded, lanes)

    in_map = lambda c, t: (c * tiles_per_chunk + t, 0)

    partials = pl.pallas_call(
        _center_loss_kernel,
        out_shape=jax.ShapeDtypeStruct((1, chunks * lanes), jnp.float32),
        grid_spec=pltpu.PrefetchScalarGridSpec(
            num_scalar_prefetch=0,
            grid=(chunks, tiles_per_chunk),
            in_specs=[
                pl.BlockSpec((tile_rows, lanes), in_map),
                pl.BlockSpec((tile_rows, lanes), in_map),
            ],
            out_specs=pl.BlockSpec((1, lanes), lambda c, t: (0, c)),
        ),
        compiler_params=pltpu.CompilerParams(
            dimension_semantics=("parallel", "arbitrary")),
    )(x2, y2)

    # Tiny final reduction over chunks*lanes partials + batch normalization.
    return jnp.sum(partials) / batch


if __name__ == "__main__":
    key = jax.random.PRNGKey(0)
    k1, k2 = jax.random.split(key)
    shape = (2, 4, 16, 16)  # batch=2, channels=4, spatial=16x16

    outputs = jax.random.normal(k1, shape, dtype=jnp.float32)
    targets = jax.random.normal(k2, shape, dtype=jnp.float32)

    loss = center_loss(outputs, targets)
    loss = jax.block_until_ready(loss)

    ref = jnp.sum((outputs - targets).astype(jnp.float32) ** 2) / shape[0]
    assert jnp.allclose(loss, ref, rtol=1e-5, atol=1e-3), (loss, ref)

    print("KERNEL_OK")
</pallas_src>

<mosaic_0001>
module attributes {stable_mosaic.version = 11 : i64} {
  func.func @_center_loss_kernel(%arg0: i32, %arg1: i32, %arg2: memref<32x512xf32, #tpu.memory_space<vmem>>, %arg3: memref<32x512xf32, #tpu.memory_space<vmem>>, %arg4: memref<1x512xf32, #tpu.memory_space<vmem>>) attributes {dimension_semantics = [#tpu.dimension_semantics<parallel>, #tpu.dimension_semantics<arbitrary>], iteration_bounds = array<i64: 1, 1>, scalar_prefetch = 0 : i64, scratch_operands = 0 : i64, tpu.core_type = #tpu.core_type<tc>, window_params = [{transform_indices = @transform_0, window_bounds = array<i64: 32, 512>}, {transform_indices = @transform_1, window_bounds = array<i64: 32, 512>}, {transform_indices = @transform_2, window_bounds = array<i64: 1, 512>}]} {
    %c0_i32 = arith.constant 0 : i32
    %0 = arith.cmpi eq, %arg1, %c0_i32 : i32
    %1 = arith.extui %0 : i1 to i32
    %c0_i32_0 = arith.constant 0 : i32
    %2 = arith.cmpi ne, %1, %c0_i32_0 : i32
    scf.if %2 {
      %cst_8 = arith.constant 0.000000e+00 : f32
      %12 = vector.broadcast %cst_8 : f32 to vector<1x512xf32>
      %c0_9 = arith.constant 0 : index
      %c0_10 = arith.constant 0 : index
      %13 = vector.load %arg4[%c0_9, %c0_10] : memref<1x512xf32, #tpu.memory_space<vmem>>, vector<1x512xf32>
      tpu.vector_store %arg4[%c0_9, %c0_10], %12 {strides = array<i32>} : memref<1x512xf32, #tpu.memory_space<vmem>>, vector<1x512xf32>,
    } else {
    }
    %c0 = arith.constant 0 : index
    %c0_1 = arith.constant 0 : index
    %3 = vector.load %arg2[%c0, %c0_1] : memref<32x512xf32, #tpu.memory_space<vmem>>, vector<32x512xf32>
    %c0_2 = arith.constant 0 : index
    %c0_3 = arith.constant 0 : index
    %4 = vector.load %arg3[%c0_2, %c0_3] : memref<32x512xf32, #tpu.memory_space<vmem>>, vector<32x512xf32>
    %5 = arith.subf %3, %4 : vector<32x512xf32>
    %c0_4 = arith.constant 0 : index
    %c0_5 = arith.constant 0 : index
    %6 = vector.load %arg4[%c0_4, %c0_5] : memref<1x512xf32, #tpu.memory_space<vmem>>, vector<1x512xf32>
    %7 = arith.mulf %5, %5 : vector<32x512xf32>
    %cst = arith.constant dense<0.000000e+00> : vector<512xf32>
    %8 = vector.multi_reduction <add>, %7, %cst [0] : vector<32x512xf32> to vector<512xf32>
    %9 = vector.shape_cast %8 : vector<512xf32> to vector<1x512xf32>
    %10 = arith.addf %6, %9 : vector<1x512xf32>
    %c0_6 = arith.constant 0 : index
    %c0_7 = arith.constant 0 : index
    %11 = vector.load %arg4[%c0_6, %c0_7] : memref<1x512xf32, #tpu.memory_space<vmem>>, vector<1x512xf32>
    tpu.vector_store %arg4[%c0_6, %c0_7], %10 {strides = array<i32>} : memref<1x512xf32, #tpu.memory_space<vmem>>, vector<1x512xf32>,
    return
  }
  func.func @transform_0(%arg0: i32, %arg1: i32) -> (i32, i32) {
    %c1_i32 = arith.constant 1 : i32
    %0 = arith.muli %arg0, %c1_i32 : i32
    %1 = arith.addi %0, %arg1 : i32
    %c0_i32 = arith.constant 0 : i32
    %c0_i32_0 = arith.constant 0 : i32
    return %1, %c0_i32 : i32, i32
  }
  func.func @transform_1(%arg0: i32, %arg1: i32) -> (i32, i32) {
    %c1_i32 = arith.constant 1 : i32
    %0 = arith.muli %arg0, %c1_i32 : i32
    %1 = arith.addi %0, %arg1 : i32
    %c0_i32 = arith.constant 0 : i32
    %c0_i32_0 = arith.constant 0 : i32
    return %1, %c0_i32 : i32, i32
  }
  func.func @transform_2(%arg0: i32, %arg1: i32) -> (i32, i32) {
    %c0_i32 = arith.constant 0 : i32
    %c0_i32_0 = arith.constant 0 : i32
    return %c0_i32, %arg0 : i32, i32
  }
}

</mosaic_0001>

<bundles_post_ra>
// kernel: tpu_custom_call.1
= control target key start
LH: loop header
LB: loop body
LE: loop exit
PB: predicated region body
PF: predicated region fallthrough
CT: control target
= control target key end

     0   :  { %7 = vsyncpa [#allocation3], 0  ;;  %s362_s0 = inlined_call_operand.hbm [shape: f32[32,512], index: 0, kind: input, shape index: {}]   ;;  %s363_s1 = inlined_call_operand.hbm [shape: f32[32,512], index: 1, kind: input, shape index: {}]   ;;  %s364_s2 = inlined_call_operand.hbm [shape: f32[1,512], index: 2, kind: output, shape index: {}]  }
   0x1   :  { %8 = vsyncpa [#allocation6], 0 }
   0x2   :  { %9 = vsyncpa [#allocation4], 0  ;;  %s294_s9 = smov [#allocation2]   ;;  %s222_s13 = scalar_lea.hbm %s362_s0, 2048 }
   0x3   :  { %s20_s10 = sshll.u32 %s294_s9, 4  ;;  %p223_p0 = scmp.ne.s32.totalorder %s362_s0, %s222_s13  ;;  %s21_s10 = int_to_ptr.vmem [resolvable:$true] %s20_s10 }
   0x4   :  { %p226_p1 = scmp.lt.u32.totalorder %s222_s13, %s362_s0 }
   0x6   :  { %p228_p2 = pnand %p226_p1, %p223_p0 }
   0x8   :  { %231 = shalt.err (!%p228_p2)
}
   0x9   :  { %s232_s18 = scalar_lea.vmem %s21_s10, 2048  ;;  %p237_p4 = scmp.lt.s32.totalorder %s21_s10, %s21_s10 }
   0xa   :  { %p233_p3 = scmp.ne.s32.totalorder %s21_s10, %s232_s18  ;;  %p238_p5 = scmp.lt.s32.totalorder %s232_s18, %s232_s18 }
   0xc   :  { %p239_p6 = por %p238_p5, %p237_p4 }
   0xe   :  { %p240_p7 = pnand %p239_p6, %p233_p3 }
  0x10   :  { %243 = shalt.err (!%p240_p7)
}
  0x11   :  { %s295_s19 = smov 512   ;;  %s296_s20 = smov 32  }
  0x12   :  { %26 = dma.hbm_to_vmem [thread:$0]  %s362_s0, 2048, %s21_s10, [#allocation3], %s295_s19, %s295_s19, %s296_s20  }
  0x13   :  { %s297_s23 = smov [#allocation5]   ;;  %s244_s27 = scalar_lea.hbm %s363_s1, 2048 }
  0x14   :  { %s37_s24 = sshll.u32 %s297_s23, 4  ;;  %p245_p8 = scmp.ne.s32.totalorder %s363_s1, %s244_s27  ;;  %s38_s24 = int_to_ptr.vmem [resolvable:$true] %s37_s24 }
  0x15   :  { %p248_p9 = scmp.lt.u32.totalorder %s244_s27, %s363_s1 }
  0x17   :  { %p250_p10 = pnand %p248_p9, %p245_p8 }
  0x19   :  { %253 = shalt.err (!%p250_p10)
}
  0x1a   :  { %s254_s4 = scalar_lea.vmem %s38_s24, 2048  ;;  %p259_p12 = scmp.lt.s32.totalorder %s38_s24, %s38_s24 }
  0x1b   :  { %p255_p11 = scmp.ne.s32.totalorder %s38_s24, %s254_s4  ;;  %p260_p13 = scmp.lt.s32.totalorder %s254_s4, %s254_s4 }
  0x1d   :  { %p261_p0 = por %p260_p13, %p259_p12 }
  0x1f   :  { %p262_p1 = pnand %p261_p0, %p255_p11 }
  0x21   :  { %265 = shalt.err (!%p262_p1)
}
  0x22   :  { %43 = dma.hbm_to_vmem [thread:$0]  %s363_s1, 2048, %s38_s24, [#allocation6], %s295_s19, %s295_s19, %s296_s20  }
  0x23   :  { %288 = dma.done.wait [#allocation3], 2048  }
  0x24   :  { %289 = vsyncadd [#allocation3], 4294965248 }
  0x25   :  { %290 = dma.done.wait [#allocation6], 2048  }
  0x26   :  { %291 = vsyncadd [#allocation6], 4294965248  ;;  %v58_v0 = vlaneseq  ;;  %v298_v2 = vmov 0.0   ;;  %v63_v3 = vld [vmem:[#allocation2] sm:$0xff]  ;;  %v64_v4 = vld [vmem:[#allocation2 + $0x8] sm:$0xff]  ;;  %s300_s1 = smov [#allocation7]  }
  0x27   :  { %v65_v5 = vld [vmem:[#allocation2 + $0x10] sm:$0xff]  ;;  %v66_v6 = vld [vmem:[#allocation2 + $0x18] sm:$0xff]  ;;  %v67_v7 = vld [vmem:[#allocation2 + $0x20] sm:$0xff]  ;;  %s205_s6 = sshll.u32 %s300_s1, 4  ;;  %s206_s6 = int_to_ptr.vmem [resolvable:$true] %s205_s6 }
  0x28   :  { %vm341_vm0 = vcmp.lt.s32.totalorder %v58_v0, 512  ;;  %v68_v8 = vld [vmem:[#allocation2 + $0x28] sm:$0xff]  ;;  %v69_v9 = vld [vmem:[#allocation2 + $0x30] sm:$0xff]  ;;  %v70_v10 = vld [vmem:[#allocation2 + $0x38] sm:$0xff]  ;;  %s266_s7 = scalar_lea.vmem %s206_s6, 64  ;;  %p271_p3 = scmp.lt.s32.totalorder %s206_s6, %s206_s6 }
  0x29   :  { %62 = vst.msk [vmem:[#allocation7] sm:$0xf] %vm341_vm0, %v298_v2  ;;  %v71_v11 = vld [vmem:[#allocation2 + $0x40] sm:$0xff]  ;;  %v72_v12 = vld [vmem:[#allocation2 + $0x48] sm:$0xff]  ;;  %v73_v13 = vld [vmem:[#allocation2 + $0x50] sm:$0xff]  ;;  %p267_p2 = scmp.ne.s32.totalorder %s206_s6, %s266_s7  ;;  %p272_p4 = scmp.lt.s32.totalorder %s266_s7, %s266_s7 }
  0x2a   :  { %v74_v14 = vld [vmem:[#allocation2 + $0x58] sm:$0xff]  ;;  %v75_v15 = vld [vmem:[#allocation2 + $0x60] sm:$0xff]  ;;  %v76_v16 = vld [vmem:[#allocation2 + $0x68] sm:$0xff] }
  0x2b   :  { %v79_v17 = vld [vmem:[#allocation5] sm:$0xff]  ;;  %v80_v18 = vld [vmem:[#allocation5 + $0x8] sm:$0xff]  ;;  %v77_v19 = vld [vmem:[#allocation2 + $0x70] sm:$0xff]  ;;  %p273_p5 = por %p272_p4, %p271_p3 }
  0x2c   :  { %v78_v20 = vld [vmem:[#allocation2 + $0x78] sm:$0xff]  ;;  %v81_v21 = vld [vmem:[#allocation5 + $0x10] sm:$0xff]  ;;  %v83_v23 = vld [vmem:[#allocation5 + $0x20] sm:$0xff]  ;;  %v95_v24 = vsub.f32 %v63_v3, %v79_v17  ;;  %v96_v25 = vsub.f32 %v64_v4, %v80_v18 }
  0x2d   :  { %v82_v22 = vld [vmem:[#allocation5 + $0x18] sm:$0xff]  ;;  %v84_v26 = vld [vmem:[#allocation5 + $0x28] sm:$0xff]  ;;  %v85_v27 = vld [vmem:[#allocation5 + $0x30] sm:$0xff]  ;;  %v97_v29 = vsub.f32 %v65_v5, %v81_v21  ;;  %v99_v31 = vsub.f32 %v67_v7, %v83_v23  ;;  %p274_p6 = pnand %p273_p5, %p267_p2 }
  0x2e   :  { %v86_v28 = vld [vmem:[#allocation5 + $0x38] sm:$0xff]  ;;  %v98_v30 = vsub.f32 %v66_v6, %v82_v22  ;;  %v87_v32 = vld [vmem:[#allocation5 + $0x40] sm:$0xff]  ;;  %v88_v33 = vld [vmem:[#allocation5 + $0x48] sm:$0xff]  ;;  %v100_v35 = vsub.f32 %v68_v8, %v84_v26  ;;  %v101_v36 = vsub.f32 %v69_v9, %v85_v27  ;;  %v112_v38 = vmul.f32 %v95_v24, %v95_v24 }
  0x2f   :  { %v89_v34 = vld [vmem:[#allocation5 + $0x50] sm:$0xff]  ;;  %v102_v37 = vsub.f32 %v70_v10, %v86_v28  ;;  %v90_v39 = vld [vmem:[#allocation5 + $0x58] sm:$0xff]  ;;  %v91_v40 = vld [vmem:[#allocation5 + $0x60] sm:$0xff]  ;;  %v103_v42 = vsub.f32 %v71_v11, %v87_v32  ;;  %v104_v43 = vsub.f32 %v72_v12, %v88_v33  ;;  %v113_v45 = vmul.f32 %v96_v25, %v96_v25 }
  0x30   :  { %v92_v41 = vld [vmem:[#allocation5 + $0x68] sm:$0xff]  ;;  %v105_v44 = vsub.f32 %v73_v13, %v89_v34  ;;  %v93_v46 = vld [vmem:[#allocation5 + $0x70] sm:$0xff]  ;;  %v94_v47 = vld [vmem:[#allocation5 + $0x78] sm:$0xff]  ;;  %v106_v48 = vsub.f32 %v74_v14, %v90_v39  ;;  %v107_v49 = vsub.f32 %v75_v15, %v91_v40  ;;  %v114_v51 = vmul.f32 %v97_v29, %v97_v29 }
  0x31   :  { %v108_v50 = vsub.f32 %v76_v16, %v92_v41  ;;  %v109_v52 = vsub.f32 %v77_v19, %v93_v46  ;;  %v110_v53 = vsub.f32 %v78_v20, %v94_v47  ;;  %v115_v54 = vmul.f32 %v98_v30, %v98_v30 }
  0x32   :  { %v116_v55 = vmul.f32 %v99_v31, %v99_v31  ;;  %v117_v56 = vmul.f32 %v100_v35, %v100_v35  ;;  %v118_v57 = vmul.f32 %v101_v36, %v101_v36  ;;  %v119_v58 = vmul.f32 %v102_v37, %v102_v37 }
  0x33   :  { %v120_v59 = vmul.f32 %v103_v42, %v103_v42  ;;  %v121_v60 = vmul.f32 %v104_v43, %v104_v43  ;;  %v122_v61 = vmul.f32 %v105_v44, %v105_v44  ;;  %v123_v62 = vmul.f32 %v106_v48, %v106_v48 }
  0x34   :  { %v124_v63 = vmul.f32 %v107_v49, %v107_v49  ;;  %v125_v2 = vmul.f32 %v108_v50, %v108_v50  ;;  %v126_v3 = vmul.f32 %v109_v52, %v109_v52  ;;  %v128_v4 = vadd.f32 %v116_v55, %v112_v38 }
  0x35   :  { %v127_v5 = vmul.f32 %v110_v53, %v110_v53  ;;  %v137_v6 = vadd.f32 %v117_v56, %v113_v45  ;;  %v146_v7 = vadd.f32 %v118_v57, %v114_v51  ;;  %v155_v8 = vadd.f32 %v119_v58, %v115_v54  ;;  %v111_v51 = vld [vmem:[#allocation7] sm:$0xf] }
  0x36   :  { %v129_v9 = vadd.f32 %v128_v4, %v120_v59  ;;  %v299_v25 = vmov 1966171168   ;;  %v174_v32 = vshrl.u32 %v58_v0, 7 }
  0x37   :  { %v138_v10 = vadd.f32 %v137_v6, %v121_v60  ;;  %v147_v11 = vadd.f32 %v146_v7, %v122_v61  ;;  %v156_v12 = vadd.f32 %v155_v8, %v123_v62  ;;  %v171_v26 = vunpack.c.l.s4 %v299_v25 }
  0x38   :  { %v130_v13 = vadd.f32 %v129_v9, %v124_v63 }
  0x39   :  { %v139_v14 = vadd.f32 %v138_v10, %v125_v2  ;;  %v148_v15 = vadd.f32 %v147_v11, %v126_v3  ;;  %v157_v16 = vadd.f32 %v156_v12, %v127_v5  ;;  %v172_v36 = vunpack.c.0.s8 %v171_v26 }
  0x3a   :  { %v131_v17 = vrot.slane %v130_v13, 4 }
  0x3b   :  { %v140_v18 = vrot.slane %v139_v14, 4  ;;  %v149_v19 = vrot.slane %v148_v15, 4  ;;  %v158_v20 = vrot.slane %v157_v16, 4  ;;  %v175_v45 = vsub.s32 %v172_v36, %v174_v32 }
  0x3c   :  { %v132_v21 = vadd.f32 %v131_v17, %v130_v13 }
  0x3d   :  { %v141_v22 = vadd.f32 %v140_v18, %v139_v14  ;;  %v150_v23 = vadd.f32 %v149_v19, %v148_v15  ;;  %v159_v24 = vadd.f32 %v158_v20, %v157_v16 }
  0x3e   :  { %v133_v27 = vrot.slane %v132_v21, 2 }
  0x3f   :  { %v142_v28 = vrot.slane %v141_v22, 2  ;;  %v151_v29 = vrot.slane %v150_v23, 2  ;;  %v160_v30 = vrot.slane %v159_v24, 2 }
  0x40   :  { %v134_v31 = vadd.f32 %v133_v27, %v132_v21 }
  0x41   :  { %v143_v33 = vadd.f32 %v142_v28, %v141_v22  ;;  %v152_v34 = vadd.f32 %v151_v29, %v150_v23  ;;  %v161_v35 = vadd.f32 %v160_v30, %v159_v24 }
  0x42   :  { %v135_v37 = vrot.slane %v134_v31, 1 }
  0x43   :  { %v144_v38 = vrot.slane %v143_v33, 1  ;;  %v153_v39 = vrot.slane %v152_v34, 1  ;;  %v162_v40 = vrot.slane %v161_v35, 1 }
  0x44   :  { %v136_v41 = vadd.f32 %v135_v37, %v134_v31 }
  0x45   :  { %v145_v42 = vadd.f32 %v144_v38, %v143_v33  ;;  %v154_v43 = vadd.f32 %v153_v39, %v152_v34  ;;  %v163_v44 = vadd.f32 %v162_v40, %v161_v35 }
  0x47   :  { %v168_v46 = vcombine.low %v136_v41, %v145_v42  ;;  %v169_v47 = vcombine.low %v154_v43, %v163_v44 }
  0x49   :  { %v176_v48 = vrot.slane %v168_v46, %v175_v45  ;;  %v183_v49 = vrot.slane %v169_v47, %v175_v45 }
  0x4b   :  { %v184_v50 = vcombine.low %v176_v48, %v183_v49 }
  0x4d   :  { %v191_v0 = vrot.slane %v184_v50, %v175_v45 }
  0x4f   :  { %v193_v52 = vadd.f32 %v191_v0, %v111_v51 }
  0x51   :  { %198 = vst.msk [vmem:[#allocation7] sm:$0xf] %vm341_vm0, %v193_v52 }
  0x52   :  { %277 = shalt.err (!%p274_p6)
}
  0x53   :  { %s278_s10 = scalar_lea.hbm %s364_s2, 64 }
  0x54   :  { %p279_p7 = scmp.ne.s32.totalorder %s364_s2, %s278_s10  ;;  %p282_p8 = scmp.lt.u32.totalorder %s278_s10, %s364_s2 }
  0x56   :  { %p284_p9 = pnand %p282_p8, %p279_p7 }
  0x58   :  { %287 = shalt.err (!%p284_p9)
}
  0x59   :  { %208 = dma.vmem_to_hbm [thread:$0]  %s206_s6, 64, %s364_s2, [#allocation4]  }
  0x5a   :  { %292 = dma.done.wait [#allocation4], 64  }
  0x5b   :  { %293 = vsyncadd [#allocation4], 4294967232 }
  0x5c   :  { %212 = vsyncpa [#allocation3], 1 }
  0x5d   :  { %213 = vsyncpa [#allocation6], 1 }
  0x5e   :  { %214 = vsyncpa [#allocation4], 1 }

</bundles_post_ra>
